<compile_context>
chip_gen: v7x
topology: tpu7x:2x2x1
jax: 0.10.0
libtpu: 0.0.40
codegen_flags: <defaults>
</compile_context>

<pallas_src>
import jax
import jax.numpy as jnp
from jax.experimental import pallas as pl
from jax.experimental.pallas import tpu as pltpu


# ----------------------------- kernel ---------------------------------------

def _silu(h):
    # sigmoid = 1 / (1 + exp(-h)); exp and the approximate reciprocal both run
    # on the EUP slot, leaving the VALU slot free (kernel is memory-bound).
    return h * pl.reciprocal(1.0 + jnp.exp(-h), approx=True)


def _edge_model_kernel(ea_ref, src_ref, dst_ref,
                       w0e_ref, w0s_ref, w0d_ref, b0_ref,
                       w1_ref, b1_ref, w2_ref, b2_ref,
                       out_ref):
    """One tile of packed edges: concat -> Linear -> SiLU -> Linear -> SiLU -> Linear."""
    cd = w0e_ref.dtype  # bf16: fast MXU path regardless of edge storage dtype

    # Layer 0 == concat([edge_attr, src, dest], 1) @ W0 + b0 (pre-split weights).
    h = (jnp.dot(ea_ref[...].astype(cd),  w0e_ref[...], preferred_element_type=jnp.float32)
         + jnp.dot(src_ref[...].astype(cd), w0s_ref[...], preferred_element_type=jnp.float32)
         + jnp.dot(dst_ref[...].astype(cd), w0d_ref[...], preferred_element_type=jnp.float32)
         + b0_ref[...])
    h = _silu(h)

    # Layer 1
    h = jnp.dot(h.astype(cd), w1_ref[...], preferred_element_type=jnp.float32) + b1_ref[...]
    h = _silu(h)

    # Layer 2 (no activation — matches MLP's last layer)
    h = jnp.dot(h.astype(cd), w2_ref[...], preferred_element_type=jnp.float32) + b2_ref[...]

    out_ref[...] = h.astype(out_ref.dtype)


# ----------------------------- wrapper ---------------------------------------

def _pack_factor(D):
    return 128 // D if (D < 128 and 128 % D == 0) else 1


def pack_params(params, dim_hidden):
    """Expand Linear weights to lane-dense block-diagonal bf16 form.

    Call ONCE (at init / param update) and reuse — this is fixed wrapper-side
    overhead that must not run in front of every forward call.
    Weights are stored (in_features, out_features); kernel computes x @ W + b.
    """
    D = dim_hidden
    pack = _pack_factor(D)
    eye = jnp.eye(pack, dtype=jnp.float32)
    expand_w = lambda w: jnp.kron(eye, w.astype(jnp.float32)).astype(jnp.bfloat16)
    expand_b = lambda b: jnp.tile(b.astype(jnp.float32), (1, pack))
    w0 = params["w0"]                          # (3D, D)
    return {
        "w0e": expand_w(w0[0 * D:1 * D, :]),
        "w0s": expand_w(w0[1 * D:2 * D, :]),
        "w0d": expand_w(w0[2 * D:3 * D, :]),
        "b0": expand_b(params["b0"]),
        "w1": expand_w(params["w1"]), "b1": expand_b(params["b1"]),
        "w2": expand_w(params["w2"]), "b2": expand_b(params["b2"]),
    }


def edge_model_forward(src, dest, edge_attr, packed, *, tile_e=None):
    """src/dest/edge_attr: (E, D) in f32 or bf16 (output matches); packed = pack_params(...)."""
    E, D = src.shape
    dt = src.dtype
    itemsize = jnp.dtype(dt).itemsize
    pack = _pack_factor(D)
    lane = pack * D
    sub = 8 if itemsize >= 4 else 16           # sublane granularity

    # Pad only to a multiple of `pack` (needed for the (E,D)->(R,lane) reshape,
    # at most pack-1 rows).  The grid itself is a cdiv grid with a partial last
    # block: rows are independent, OOB reads are harmless, OOB writes dropped.
    R = -(-E // pack)
    E_pack = R * pack

    def pack_edges(x):
        x = x.astype(dt)
        if E_pack != E:
            x = jnp.pad(x, ((0, E_pack - E), (0, 0)))
        return x.reshape(R, lane)              # free row-major reshape

    ea_p, src_p, dst_p = map(pack_edges, (edge_attr, src, dest))

    # ---- generation-aware VMEM budget & tile sizing -------------------------
    try:
        vmem_cap = int(pltpu.get_tpu_info().vmem_capacity_bytes)
    except Exception:
        vmem_cap = 64 * 1024 * 1024            # conservative (v7x per-TC)
    cap = int(0.85 * vmem_cap)                 # never request more than this
    budget = min(int(0.70 * vmem_cap), 48 * 1024 * 1024)

    # bytes per packed row: (3 in + 1 out) x 2 pipeline buffers in storage dtype
    # + ~3 live f32 intermediates inside the kernel.
    per_row = 8 * lane * itemsize + 3 * lane * 4
    w_bytes = 5 * lane * lane * 2 + 3 * lane * 4     # bf16 weights + f32 biases
    avail = max(budget - 2 * w_bytes, sub * per_row)
    tile_r = min(8192, max(sub, (avail // per_row) // sub * sub))
    if tile_e is not None:
        want_r = max(1, -(-tile_e // pack))
        tile_r = min(tile_r, max(sub, (want_r // sub) * sub))
    if tile_r >= R:
        tile_r = R                              # single full block (exact dims ok)
    n_blocks = -(-R // tile_r)

    # 64 MiB-VMEM chips (v7x) have 2 TensorCores: give the parallel grid >= 2
    # blocks so both cores get work.
    if vmem_cap <= 64 * 1024 * 1024 and n_blocks == 1 and R >= 2 * sub:
        tile_r = ((-(-R // 2) + sub - 1) // sub) * sub
        n_blocks = -(-R // tile_r)

    est = 8 * tile_r * lane * itemsize + 3 * tile_r * lane * 4 + 2 * w_bytes
    vmem_limit = None
    if est > 12 * 1024 * 1024:                  # below this every chip's default fits
        vmem_limit = min(cap, max(int(est * 1.4), 32 * 1024 * 1024))

    edge_spec = pl.BlockSpec((tile_r, lane), lambda i: (i, 0))
    bcast = lambda a: pl.BlockSpec(a.shape, lambda i: (0, 0))

    out = pl.pallas_call(
        _edge_model_kernel,
        out_shape=jax.ShapeDtypeStruct((R, lane), dt),
        grid=(n_blocks,),
        in_specs=[
            edge_spec,            # edge_attr (packed)
            edge_spec,            # src (packed)
            edge_spec,            # dest (packed)
            bcast(packed["w0e"]), bcast(packed["w0s"]), bcast(packed["w0d"]),
            bcast(packed["b0"]),
            bcast(packed["w1"]), bcast(packed["b1"]),
            bcast(packed["w2"]), bcast(packed["b2"]),
        ],
        out_specs=edge_spec,
        compiler_params=pltpu.CompilerParams(
            dimension_semantics=("parallel",),
            vmem_limit_bytes=vmem_limit),
    )(ea_p, src_p, dst_p,
      packed["w0e"], packed["w0s"], packed["w0d"], packed["b0"],
      packed["w1"], packed["b1"], packed["w2"], packed["b2"])

    return out.reshape(E_pack, D)[:E]


# ----------------------------- reference / init ------------------------------

def init_params(key, dim_hidden):
    """nn.Linear-style init: U(-1/sqrt(fan_in), 1/sqrt(fan_in)); weights (in, out)."""
    D = dim_hidden
    keys = jax.random.split(key, 6)

    def lin(kw, kb, fan_in, fan_out):
        bound = 1.0 / jnp.sqrt(fan_in)
        w = jax.random.uniform(kw, (fan_in, fan_out), jnp.float32, -bound, bound)
        b = jax.random.uniform(kb, (1, fan_out), jnp.float32, -bound, bound)
        return w, b

    w0, b0 = lin(keys[0], keys[1], 3 * D, D)
    w1, b1 = lin(keys[2], keys[3], D, D)
    w2, b2 = lin(keys[4], keys[5], D, D)
    return {"w0": w0, "b0": b0, "w1": w1, "b1": b1, "w2": w2, "b2": b2}


def reference_forward(src, dest, edge_attr, params):
    """Pure-JAX f32 reference mirroring the PyTorch forward (u=None path)."""
    x = jnp.concatenate([edge_attr, src, dest], axis=1)
    h = x @ params["w0"] + params["b0"]
    h = h * jax.nn.sigmoid(h)
    h = h @ params["w1"] + params["b1"]
    h = h * jax.nn.sigmoid(h)
    h = h @ params["w2"] + params["b2"]
    return h


if __name__ == "__main__":
    DIM_HIDDEN = 32          # args.dim_hidden (n_hidden = 2)
    E = 256                  # number of edges (small demo)

    key = jax.random.PRNGKey(0)
    k_src, k_dst, k_ea, k_par, k2 = jax.random.split(key, 5)

    src = jax.random.normal(k_src, (E, DIM_HIDDEN), jnp.float32)
    dest = jax.random.normal(k_dst, (E, DIM_HIDDEN), jnp.float32)
    edge_attr = jax.random.normal(k_ea, (E, DIM_HIDDEN), jnp.float32)
    params = init_params(k_par, DIM_HIDDEN)

    # Pack weights ONCE (hoisted out of the forward wrapper).
    packed = pack_params(params, DIM_HIDDEN)

    ref = reference_forward(src, dest, edge_attr, params)

    # 1) f32 storage path (MXU operands are still bf16 -> loose-ish tolerance)
    out = jax.block_until_ready(edge_model_forward(src, dest, edge_attr, packed))
    assert out.shape == (E, DIM_HIDDEN)
    assert jnp.allclose(out, ref, atol=3e-2, rtol=3e-2), "f32 mismatch vs. JAX reference"

    # 2) bf16 storage path (halves HBM traffic on this memory-bound kernel)
    out_bf16 = jax.block_until_ready(edge_model_forward(
        src.astype(jnp.bfloat16), dest.astype(jnp.bfloat16),
        edge_attr.astype(jnp.bfloat16), packed))
    assert out_bf16.dtype == jnp.bfloat16
    assert jnp.allclose(out_bf16.astype(jnp.float32), ref, atol=1e-1, rtol=1e-1), \
        "bf16 mismatch vs. JAX reference"

    # 3) ragged E (not a multiple of pack or tile): pack-only padding + partial last block
    ka, kb, kc = jax.random.split(k2, 3)
    E2 = 102
    src2 = jax.random.normal(ka, (E2, DIM_HIDDEN), jnp.float32)
    dest2 = jax.random.normal(kb, (E2, DIM_HIDDEN), jnp.float32)
    ea2 = jax.random.normal(kc, (E2, DIM_HIDDEN), jnp.float32)
    out2 = jax.block_until_ready(edge_model_forward(src2, dest2, ea2, packed, tile_e=64))
    ref2 = reference_forward(src2, dest2, ea2, params)
    assert out2.shape == (E2, DIM_HIDDEN)
    assert jnp.allclose(out2, ref2, atol=3e-2, rtol=3e-2), "ragged-E mismatch vs. JAX reference"

    print("KERNEL_OK")
</pallas_src>

<mosaic_0001>
module attributes {stable_mosaic.version = 11 : i64} {
  func.func @_edge_model_kernel(%arg0: i32, %arg1: memref<32x128xf32, #tpu.memory_space<vmem>>, %arg2: memref<32x128xf32, #tpu.memory_space<vmem>>, %arg3: memref<32x128xf32, #tpu.memory_space<vmem>>, %arg4: memref<128x128xbf16, #tpu.memory_space<vmem>>, %arg5: memref<128x128xbf16, #tpu.memory_space<vmem>>, %arg6: memref<128x128xbf16, #tpu.memory_space<vmem>>, %arg7: memref<1x128xf32, #tpu.memory_space<vmem>>, %arg8: memref<128x128xbf16, #tpu.memory_space<vmem>>, %arg9: memref<1x128xf32, #tpu.memory_space<vmem>>, %arg10: memref<128x128xbf16, #tpu.memory_space<vmem>>, %arg11: memref<1x128xf32, #tpu.memory_space<vmem>>, %arg12: memref<32x128xf32, #tpu.memory_space<vmem>>) attributes {dimension_semantics = [#tpu.dimension_semantics<parallel>], iteration_bounds = array<i64: 2>, scalar_prefetch = 0 : i64, scratch_operands = 0 : i64, tpu.core_type = #tpu.core_type<tc>, window_params = [{transform_indices = @transform_0, window_bounds = array<i64: 32, 128>}, {transform_indices = @transform_1, window_bounds = array<i64: 32, 128>}, {transform_indices = @transform_2, window_bounds = array<i64: 32, 128>}, {pipeline_mode = #tpu.pipeline_mode<synchronous>, transform_indices = @transform_3, window_bounds = array<i64: 128, 128>}, {pipeline_mode = #tpu.pipeline_mode<synchronous>, transform_indices = @transform_4, window_bounds = array<i64: 128, 128>}, {pipeline_mode = #tpu.pipeline_mode<synchronous>, transform_indices = @transform_5, window_bounds = array<i64: 128, 128>}, {pipeline_mode = #tpu.pipeline_mode<synchronous>, transform_indices = @transform_6, window_bounds = array<i64: 1, 128>}, {pipeline_mode = #tpu.pipeline_mode<synchronous>, transform_indices = @transform_7, window_bounds = array<i64: 128, 128>}, {pipeline_mode = #tpu.pipeline_mode<synchronous>, transform_indices = @transform_8, window_bounds = array<i64: 1, 128>}, {pipeline_mode = #tpu.pipeline_mode<synchronous>, transform_indices = @transform_9, window_bounds = array<i64: 128, 128>}, {pipeline_mode = #tpu.pipeline_mode<synchronous>, transform_indices = @transform_10, window_bounds = array<i64: 1, 128>}, {transform_indices = @transform_11, window_bounds = array<i64: 32, 128>}]} {
    %c0 = arith.constant 0 : index
    %c0_0 = arith.constant 0 : index
    %0 = vector.load %arg1[%c0, %c0_0] : memref<32x128xf32, #tpu.memory_space<vmem>>, vector<32x128xf32>
    %1 = arith.truncf %0 : vector<32x128xf32> to vector<32x128xbf16>
    %c0_1 = arith.constant 0 : index
    %c0_2 = arith.constant 0 : index
    %2 = vector.load %arg4[%c0_1, %c0_2] : memref<128x128xbf16, #tpu.memory_space<vmem>>, vector<128x128xbf16>
    %cst = arith.constant dense<0.000000e+00> : vector<32x128xf32>
    %3 = tpu.matmul %1, %2, %cst {dimension_numbers = #tpu.dot_dimension_numbers<[1], [0], [0], [1], [0, 0, 1, 1], [], []>} : vector<32x128xbf16>, vector<128x128xbf16>, vector<32x128xf32> -> vector<32x128xf32>
    %c0_3 = arith.constant 0 : index
    %c0_4 = arith.constant 0 : index
    %4 = vector.load %arg2[%c0_3, %c0_4] : memref<32x128xf32, #tpu.memory_space<vmem>>, vector<32x128xf32>
    %5 = arith.truncf %4 : vector<32x128xf32> to vector<32x128xbf16>
    %c0_5 = arith.constant 0 : index
    %c0_6 = arith.constant 0 : index
    %6 = vector.load %arg5[%c0_5, %c0_6] : memref<128x128xbf16, #tpu.memory_space<vmem>>, vector<128x128xbf16>
    %cst_7 = arith.constant dense<0.000000e+00> : vector<32x128xf32>
    %7 = tpu.matmul %5, %6, %cst_7 {dimension_numbers = #tpu.dot_dimension_numbers<[1], [0], [0], [1], [0, 0, 1, 1], [], []>} : vector<32x128xbf16>, vector<128x128xbf16>, vector<32x128xf32> -> vector<32x128xf32>
    %8 = arith.addf %3, %7 : vector<32x128xf32>
    %c0_8 = arith.constant 0 : index
    %c0_9 = arith.constant 0 : index
    %9 = vector.load %arg3[%c0_8, %c0_9] : memref<32x128xf32, #tpu.memory_space<vmem>>, vector<32x128xf32>
    %10 = arith.truncf %9 : vector<32x128xf32> to vector<32x128xbf16>
    %c0_10 = arith.constant 0 : index
    %c0_11 = arith.constant 0 : index
    %11 = vector.load %arg6[%c0_10, %c0_11] : memref<128x128xbf16, #tpu.memory_space<vmem>>, vector<128x128xbf16>
    %cst_12 = arith.constant dense<0.000000e+00> : vector<32x128xf32>
    %12 = tpu.matmul %10, %11, %cst_12 {dimension_numbers = #tpu.dot_dimension_numbers<[1], [0], [0], [1], [0, 0, 1, 1], [], []>} : vector<32x128xbf16>, vector<128x128xbf16>, vector<32x128xf32> -> vector<32x128xf32>
    %13 = arith.addf %8, %12 : vector<32x128xf32>
    %c0_13 = arith.constant 0 : index
    %c0_14 = arith.constant 0 : index
    %14 = vector.load %arg7[%c0_13, %c0_14] : memref<1x128xf32, #tpu.memory_space<vmem>>, vector<1x128xf32>
    %15 = vector.broadcast %14 : vector<1x128xf32> to vector<32x128xf32>
    %16 = arith.addf %13, %15 : vector<32x128xf32>
    %cst_15 = arith.constant 0.000000e+00 : f32
    %17 = vector.broadcast %cst_15 : f32 to vector<32x128xf32>
    %18 = arith.subf %17, %16 : vector<32x128xf32>
    %19 = math.exp %18 : vector<32x128xf32>
    %cst_16 = arith.constant 1.000000e+00 : f32
    %20 = vector.broadcast %cst_16 : f32 to vector<32x128xf32>
    %21 = arith.addf %20, %19 : vector<32x128xf32>
    %22 = tpu.reciprocal %21 {approx = true} : vector<32x128xf32> -> vector<32x128xf32>
    %23 = arith.mulf %16, %22 : vector<32x128xf32>
    %24 = arith.truncf %23 : vector<32x128xf32> to vector<32x128xbf16>
    %c0_17 = arith.constant 0 : index
    %c0_18 = arith.constant 0 : index
    %25 = vector.load %arg8[%c0_17, %c0_18] : memref<128x128xbf16, #tpu.memory_space<vmem>>, vector<128x128xbf16>
    %cst_19 = arith.constant dense<0.000000e+00> : vector<32x128xf32>
    %26 = tpu.matmul %24, %25, %cst_19 {dimension_numbers = #tpu.dot_dimension_numbers<[1], [0], [0], [1], [0, 0, 1, 1], [], []>} : vector<32x128xbf16>, vector<128x128xbf16>, vector<32x128xf32> -> vector<32x128xf32>
    %c0_20 = arith.constant 0 : index
    %c0_21 = arith.constant 0 : index
    %27 = vector.load %arg9[%c0_20, %c0_21] : memref<1x128xf32, #tpu.memory_space<vmem>>, vector<1x128xf32>
    %28 = vector.broadcast %27 : vector<1x128xf32> to vector<32x128xf32>
    %29 = arith.addf %26, %28 : vector<32x128xf32>
    %cst_22 = arith.constant 0.000000e+00 : f32
    %30 = vector.broadcast %cst_22 : f32 to vector<32x128xf32>
    %31 = arith.subf %30, %29 : vector<32x128xf32>
    %32 = math.exp %31 : vector<32x128xf32>
    %cst_23 = arith.constant 1.000000e+00 : f32
    %33 = vector.broadcast %cst_23 : f32 to vector<32x128xf32>
    %34 = arith.addf %33, %32 : vector<32x128xf32>
    %35 = tpu.reciprocal %34 {approx = true} : vector<32x128xf32> -> vector<32x128xf32>
    %36 = arith.mulf %29, %35 : vector<32x128xf32>
    %37 = arith.truncf %36 : vector<32x128xf32> to vector<32x128xbf16>
    %c0_24 = arith.constant 0 : index
    %c0_25 = arith.constant 0 : index
    %38 = vector.load %arg10[%c0_24, %c0_25] : memref<128x128xbf16, #tpu.memory_space<vmem>>, vector<128x128xbf16>
    %cst_26 = arith.constant dense<0.000000e+00> : vector<32x128xf32>
    %39 = tpu.matmul %37, %38, %cst_26 {dimension_numbers = #tpu.dot_dimension_numbers<[1], [0], [0], [1], [0, 0, 1, 1], [], []>} : vector<32x128xbf16>, vector<128x128xbf16>, vector<32x128xf32> -> vector<32x128xf32>
    %c0_27 = arith.constant 0 : index
    %c0_28 = arith.constant 0 : index
    %40 = vector.load %arg11[%c0_27, %c0_28] : memref<1x128xf32, #tpu.memory_space<vmem>>, vector<1x128xf32>
    %41 = vector.broadcast %40 : vector<1x128xf32> to vector<32x128xf32>
    %42 = arith.addf %39, %41 : vector<32x128xf32>
    %c0_29 = arith.constant 0 : index
    %c0_30 = arith.constant 0 : index
    %43 = vector.load %arg12[%c0_29, %c0_30] : memref<32x128xf32, #tpu.memory_space<vmem>>, vector<32x128xf32>
    tpu.vector_store %arg12[%c0_29, %c0_30], %42 {strides = array<i32>} : memref<32x128xf32, #tpu.memory_space<vmem>>, vector<32x128xf32>,
    return
  }
  func.func @transform_0(%arg0: i32) -> (i32, i32) {
    %c0_i32 = arith.constant 0 : i32
    %c0_i32_0 = arith.constant 0 : i32
    return %arg0, %c0_i32 : i32, i32
  }
  func.func @transform_1(%arg0: i32) -> (i32, i32) {
    %c0_i32 = arith.constant 0 : i32
    %c0_i32_0 = arith.constant 0 : i32
    return %arg0, %c0_i32 : i32, i32
  }
  func.func @transform_2(%arg0: i32) -> (i32, i32) {
    %c0_i32 = arith.constant 0 : i32
    %c0_i32_0 = arith.constant 0 : i32
    return %arg0, %c0_i32 : i32, i32
  }
  func.func @transform_3(%arg0: i32) -> (i32, i32) {
    %c0_i32 = arith.constant 0 : i32
    %c0_i32_0 = arith.constant 0 : i32
    %c0_i32_1 = arith.constant 0 : i32
    return %c0_i32, %c0_i32_0 : i32, i32
  }
  func.func @transform_4(%arg0: i32) -> (i32, i32) {
    %c0_i32 = arith.constant 0 : i32
    %c0_i32_0 = arith.constant 0 : i32
    %c0_i32_1 = arith.constant 0 : i32
    return %c0_i32, %c0_i32_0 : i32, i32
  }
  func.func @transform_5(%arg0: i32) -> (i32, i32) {
    %c0_i32 = arith.constant 0 : i32
    %c0_i32_0 = arith.constant 0 : i32
    %c0_i32_1 = arith.constant 0 : i32
    return %c0_i32, %c0_i32_0 : i32, i32
  }
  func.func @transform_6(%arg0: i32) -> (i32, i32) {
    %c0_i32 = arith.constant 0 : i32
    %c0_i32_0 = arith.constant 0 : i32
    %c0_i32_1 = arith.constant 0 : i32
    return %c0_i32, %c0_i32_0 : i32, i32
  }
  func.func @transform_7(%arg0: i32) -> (i32, i32) {
    %c0_i32 = arith.constant 0 : i32
    %c0_i32_0 = arith.constant 0 : i32
    %c0_i32_1 = arith.constant 0 : i32
    return %c0_i32, %c0_i32_0 : i32, i32
  }
  func.func @transform_8(%arg0: i32) -> (i32, i32) {
    %c0_i32 = arith.constant 0 : i32
    %c0_i32_0 = arith.constant 0 : i32
    %c0_i32_1 = arith.constant 0 : i32
    return %c0_i32, %c0_i32_0 : i32, i32
  }
  func.func @transform_9(%arg0: i32) -> (i32, i32) {
    %c0_i32 = arith.constant 0 : i32
    %c0_i32_0 = arith.constant 0 : i32
    %c0_i32_1 = arith.constant 0 : i32
    return %c0_i32, %c0_i32_0 : i32, i32
  }
  func.func @transform_10(%arg0: i32) -> (i32, i32) {
    %c0_i32 = arith.constant 0 : i32
    %c0_i32_0 = arith.constant 0 : i32
    %c0_i32_1 = arith.constant 0 : i32
    return %c0_i32, %c0_i32_0 : i32, i32
  }
  func.func @transform_11(%arg0: i32) -> (i32, i32) {
    %c0_i32 = arith.constant 0 : i32
    %c0_i32_0 = arith.constant 0 : i32
    return %arg0, %c0_i32 : i32, i32
  }
}

</mosaic_0001>

<bundles_post_ra>
// kernel: tpu_custom_call.1
= control target key start
LH: loop header
LB: loop body
LE: loop exit
PB: predicated region body
PF: predicated region fallthrough
CT: control target
= control target key end

     0   :  { %s2655_s0 = inlined_call_operand.hbm [shape: f32[64,128], index: 0, kind: input, shape index: {}]   ;;  %s2656_s1 = inlined_call_operand.hbm [shape: f32[64,128], index: 1, kind: input, shape index: {}]   ;;  %s2657_s2 = inlined_call_operand.hbm [shape: f32[64,128], index: 2, kind: input, shape index: {}]   ;;  %s2658_s3 = inlined_call_operand.hbm [shape: bf16[128,128], index: 3, kind: input, shape index: {}]   ;;  %s2659_s4 = inlined_call_operand.hbm [shape: bf16[128,128], index: 4, kind: input, shape index: {}]   ;;  %s2660_s5 = inlined_call_operand.hbm [shape: bf16[128,128], index: 5, kind: input, shape index: {}]   ;;  %s2661_s6 = inlined_call_operand.vmem [shape: f32[1,128], index: 6, kind: input, shape index: {}]   ;;  %s2662_s7 = inlined_call_operand.hbm [shape: bf16[128,128], index: 7, kind: input, shape index: {}]   ;;  %s2663_s8 = inlined_call_operand.vmem [shape: f32[1,128], index: 8, kind: input, shape index: {}]   ;;  %s2664_s9 = inlined_call_operand.hbm [shape: bf16[128,128], index: 9, kind: input, shape index: {}]   ;;  %s2665_s10 = inlined_call_operand.vmem [shape: f32[1,128], index: 10, kind: input, shape index: {}]   ;;  %s2666_s11 = inlined_call_operand.hbm [shape: f32[64,128], index: 11, kind: output, shape index: {}]  }
   0x1   :  { %2698 = sst [smem:[#allocation30_spill]] %s2656_s1 }
   0x2   :  { %2699 = sst [smem:[#allocation31_spill]] %s2658_s3 }
   0x3   :  { %2700 = sst [smem:[#allocation32_spill]] %s2660_s5 }
   0x4   :  { %2701 = sst [smem:[#allocation33_spill]] %s2661_s6 }
   0x5   :  { %2702 = sst [smem:[#allocation34_spill]] %s2663_s8 }
   0x6   :  { %2703 = sst [smem:[#allocation35_spill]] %s2665_s10 }
   0x7   :  { %2704 = sst [smem:[#allocation36_spill]] %s2666_s11 }
   0x8   :  { %16 = vsyncpa [#allocation3], 0 }
   0x9   :  { %18 = vsyncpa [#allocation3 + $0x1], 0 }
   0xa   :  { %19 = vsyncpa [#allocation6], 0 }
   0xb   :  { %21 = vsyncpa [#allocation6 + $0x1], 0 }
   0xc   :  { %22 = vsyncpa [#allocation9], 0 }
   0xd   :  { %23 = vsyncpa [#allocation12], 0 }
   0xe   :  { %24 = vsyncpa [#allocation15], 0 }
   0xf   :  { %25 = vsyncpa [#allocation4], 0 }
  0x10   :  { %27 = vsyncpa [#allocation4 + $0x1], 0  ;;  %s2217_s17 = smov 0   ;;  %s2219_s18 = smov 0  }
  0x11   :  { %s2221_s19 = smov 0   ;;  %s2223_s20 = smov 0  }
  0x12 LB: > { %2705 = sst [smem:[#allocation23_spill]] %s2128_s17  ;;  %s2142_s21 = smov [#allocation8]   ;;  %s2140_s20 = sphi %s2223_s20, %s2753_s20   ;;  %s2136_s19 = sphi %s2221_s19, %s2757_s19   ;;  %s2132_s18 = sphi %s2219_s18, %s2756_s18   ;;  %s2128_s17 = sphi %s2217_s17, %s2755_s17  }
  0x13   : > { %2706 = sst [smem:[#allocation24_spill]] %s2140_s20  ;;  %s322_s22 = sshll.u32 %s2142_s21, 4  ;;  %s2244_s22 = int_to_ptr.vmem [resolvable:$true] %s322_s22 }
  0x14   : > { %s2238_s23 = sadd.s32 4294967295, %s2140_s20   ;;  %p1407_p0 = scmp.ge.s32.totalorder %s2140_s20, 1 }
  0x15   : > { %2707 = sst [smem:[#allocation25_spill]] %s2238_s23  ;;  %p2667_p1 = scmp.eq.s32.totalorder %s2238_s23, 0 }
  0x16   : > { %p297_p2 = scmp.eq.s32.totalorder %s2238_s23, 1  ;;  %p310_p3 = scmp.lt.s32.totalorder %s2140_s20, 3 }
  0x17   : > { %s2143_s25 = smov [#allocation11]   ;;  %s2710_s3 = sld [smem:[#allocation31_spill]] }
  0x18   : > { %p2246_p4 = pnand %p1407_p0, %p310_p3  ;;  %s348_s26 = sshll.u32 %s2143_s25, 4  ;;  %s2253_s26 = int_to_ptr.vmem [resolvable:$true] %s348_s26 }
  0x1a   : > { %s2708_s24 = scalar_select %p2246_p4, 1, 0 }
  0x1b   : > { %p1671_p6 = pneg %p2246_p4 }
  0x1d   : > { %p2257_p7 = pnand %p1671_p6, %p2667_p1  ;;  %s1828_s30 = scalar_lea.hbm %s2710_s3, 1024 }
  0x1e   : > { %p1829_p8 = scmp.ne.s32.totalorder %s2710_s3, %s1828_s30  ;;  %p1835_p12 = scmp.lt.u32.totalorder %s1828_s30, %s2710_s3 }
  0x1f   : > { %s2709_s27 = scalar_select %p2257_p7, 1, 0 }
  0x20   : > { %p2269_p9 = pneg %p2257_p7 }
  0x22   : > { %s2711_s14 = scalar_select %p2269_p9, 1, 0 }
  0x23   : > { %p1831_p10 = pnand %p2269_p9, %p1829_p8 }
  0x25   : > { %p1832_p11 = pneg %p1831_p10 }
  0x27   : > { %p1837_p13 = pnand %p1835_p12, %p1832_p11 }
  0x29   : > { %1840 = shalt.err (!%p1837_p13)
}
  0x2a   : > { %s1841_s21 = scalar_lea.vmem %s2244_s22, 1024  ;;  %p1849_p5 = scmp.lt.s32.totalorder %s2244_s22, %s2244_s22 }
  0x2b   : > { %p1842_p0 = scmp.ne.s32.totalorder %s2244_s22, %s1841_s21  ;;  %p1850_p1 = scmp.lt.s32.totalorder %s1841_s21, %s1841_s21 }
  0x2d   : > { %p1844_p3 = pnand %p1842_p0, %p2269_p9  ;;  %p1851_p8 = por %p1850_p1, %p1849_p5 }
  0x2f   : > { %p1845_p6 = pneg %p1844_p3 }
  0x31   : > { %p1852_p10 = pnand %p1851_p8, %p1845_p6 }
  0x33   : > { %1855 = shalt.err (!%p1852_p10)
}
  0x34   : > { %s2670_s25 = smov 64   ;;  %s2672_s28 = smov 4  }
  0x35   : > { %1674 = dma.hbm_to_vmem [thread:$0]  (!%p2257_p7), %s2710_s3, 1024, %s2244_s22, [#allocation9], %s2670_s25, %s2670_s25, %s2672_s28  }
  0x36   : > { %s2712_s5 = sld [smem:[#allocation32_spill]] }
  0x3c   : > { %s1856_s15 = scalar_lea.hbm %s2712_s5, 1024 }
  0x3d   : > { %p1857_p1 = scmp.ne.s32.totalorder %s2712_s5, %s1856_s15  ;;  %p1863_p12 = scmp.lt.u32.totalorder %s1856_s15, %s2712_s5 }
  0x3f   : > { %p1859_p5 = pnand %p1857_p1, %p2269_p9 }
  0x41   : > { %p1860_p11 = pneg %p1859_p5 }
  0x43   : > { %p1865_p13 = pnand %p1863_p12, %p1860_p11 }
  0x45   : > { %1868 = shalt.err (!%p1865_p13)
}
  0x46   : > { %s1869_s22 = scalar_lea.vmem %s2253_s26, 1024  ;;  %p1877_p8 = scmp.lt.s32.totalorder %s2253_s26, %s2253_s26 }
  0x47   : > { %p1870_p0 = scmp.ne.s32.totalorder %s2253_s26, %s1869_s22  ;;  %p1878_p10 = scmp.lt.s32.totalorder %s1869_s22, %s1869_s22 }
  0x49   : > { %p1872_p3 = pnand %p1870_p0, %p2269_p9  ;;  %p1879_p1 = por %p1878_p10, %p1877_p8 }
  0x4b   : > { %p1873_p6 = pneg %p1872_p3 }
  0x4d   : > { %p1880_p5 = pnand %p1879_p1, %p1873_p6 }
  0x4f   : > { %1883 = shalt.err (!%p1880_p5)
}
  0x50   : > { %1680 = dma.hbm_to_vmem [thread:$0]  (!%p2257_p7), %s2712_s5, 1024, %s2253_s26, [#allocation12], %s2670_s25, %s2670_s25, %s2672_s28  }
  0x51   : > { %s1406_s29 = sadd.s32 4294967294, %s2140_s20   ;;  %s2321_s30 = sadd.s32 1, %s2140_s20  }
  0x52   : > { %2713 = sst [smem:[#allocation26_spill]] %s2321_s30  ;;  %s40_s12 = sadd.s32 1, %s2136_s19 }
  0x53   : > { %s37_s13 = ssub.s32 %s2140_s20, %s2321_s30  ;;  %p47_p11 = scmp.ne.s32.totalorder %s2136_s19, %s2132_s18 }
  0x54   : > { %p38_p12 = scmp.eq.s32.totalorder %s37_s13, 0  ;;  %p48_p13 = scmp.eq.s32.totalorder %s2140_s20, 0 }
  0x55   : > { %p53_p0 = scmp.ne.s32.totalorder %s2132_s18, %s2128_s17  ;;  %p2333_p3 = por %p297_p2, %p47_p11 }
  0x56   : > { %s2338_s16 = scalar_select %p38_p12, %s2136_s19, %s40_s12  }
  0x57   : > { %s2714_s15 = scalar_select %p2333_p3, 1, 0 }
  0x58   : > { %2716 = sst [smem:[#allocation28_spill]] %s2338_s16  ;;  %p49_p6 = por %p48_p13, %p47_p11 }
  0x59   : > { %2715 = sst [smem:[#allocation27_spill]] %s2714_s15  ;;  %p2717_p8 = scmp.eq.s32.totalorder %s2238_s23, 0 }
  0x5a   : > { %p303_p1 = scmp.eq.s32.totalorder %s1406_s29, 1  ;;  %p1706_p5 = scmp.lt.s32.totalorder %s2140_s20, 2 }
  0x5b   : > { %p2342_p10 = por %p2717_p8, %p53_p0  ;;  %s2674_s21 = sand.u32 1, %s2136_s19  }
  0x5c   : > { %s2349_s22 = sshll.u32 %s2140_s20, 9  ;;  %p2351_p4 = por %p303_p1, %p53_p0 }
  0x5d   : > { %s2718_s26 = scalar_select %p2342_p10, 1, 0 }
  0x5e   : > { %s2719_s10 = scalar_select %p2351_p4, 1, 0 }
  0x5f   : > { %s2357_s11 = sshll.u32 %s2674_s21, 5  ;;  %p2359_p2 = pnand %p1706_p5, %p49_p6 }
  0x60   : > { %2720 = sst [smem:[#allocation29_spill]] %s2719_s10  ;;  %s418_s13 = sand.u32 1, %s2140_s20  }
  0x61   : > { %s2721_s12 = scalar_select %p2359_p2, 1, 0 }
  0x62   : > { %s2722_s1 = sld [smem:[#allocation30_spill]]  ;;  %s422_s3 = scalar_lea.vmem [#allocation5], %s2357_s11 }
  0x63   : > { %s429_s5 = sshll.u32 %s422_s3, 4  ;;  %s2146_s21 = smov [#allocation10]   ;;  %s2371_s5 = int_to_ptr.vmem [resolvable:$true] %s429_s5 }
  0x64   : > { %s2373_s16 = sshll.u32 %s2146_s21, 4  ;;  %s2375_s30 = scalar_lea.sflag [#allocation6], %s418_s13  ;;  %s336_s16 = int_to_ptr.vmem [resolvable:$true] %s2373_s16 }
  0x65   : > { %p2381_p12 = pneg %p2359_p2 }
  0x67   : > { %s2723_s25 = scalar_select %p2381_p12, 1, 0 }
  0x68   : > { %s2368_s28 = scalar_lea.hbm %s2722_s1, %s2349_s22  ;;  %s1889_s20 = scalar_lea.hbm %s2722_s1, 1024 }
  0x69   : > { %s1884_s10 = scalar_lea.hbm %s2368_s28, 512  ;;  %p1890_p6 = scmp.lt.u32.totalorder %s2368_s28, %s2722_s1 }
  0x6a   : > { %p1885_p11 = scmp.ne.s32.totalorder %s2368_s28, %s1884_s10  ;;  %p1891_p8 = scmp.lt.u32.totalorder %s1889_s20, %s1884_s10 }
  0x6b   : > { %p1893_p5 = scmp.lt.u32.totalorder %s1884_s10, %s2368_s28 }
  0x6c   : > { %p1887_p13 = pnand %p2381_p12, %p1885_p11  ;;  %p1892_p1 = por %p1891_p8, %p1890_p6 }
  0x6e   : > { %p1888_p0 = pneg %p1887_p13  ;;  %p1894_p4 = por %p1893_p5, %p1892_p1 }
  0x70   : > { %p1895_p3 = pnand %p1894_p4, %p1888_p0 }
  0x72   : > { %1898 = shalt.err (!%p1895_p3)
}
  0x73   : > { %s1899_s13 = scalar_lea.vmem %s2371_s5, 512  ;;  %s2147_s29 = smov [#allocation5]  }
  0x74   : > { %p1900_p11 = scmp.ne.s32.totalorder %s2371_s5, %s1899_s13  ;;  %s1904_s3 = sshll.u32 %s2147_s29, 4  ;;  %s1905_s3 = int_to_ptr.vmem [resolvable:$false] %s1904_s3 }
  0x75   : > { %s1906_s17 = scalar_lea.vmem %s1905_s3, 1024  ;;  %p1907_p7 = scmp.lt.s32.totalorder %s2371_s5, %s1905_s3 }
  0x76   : > { %p1902_p13 = pnand %p1900_p11, %p2381_p12  ;;  %p1908_p9 = scmp.lt.s32.totalorder %s1906_s17, %s1899_s13 }
  0x78   : > { %p1903_p10 = pneg %p1902_p13  ;;  %p1909_p6 = por %p1908_p9, %p1907_p7 }
  0x7a   : > { %p1910_p8 = pnand %p1909_p6, %p1903_p10 }
  0x7c   : > { %1913 = shalt.err (!%p1910_p8)
}
  0x7d   : > { %s2690_s20 = smov 128   ;;  %s2692_s10 = smov 8  }
  0x7e   : > { %1693 = dma.hbm_to_vmem [thread:$0]  (!%p2359_p2), %s2368_s28, 512, %s2371_s5, %s2375_s30, %s2690_s20, %s2690_s20, %s2692_s10  }
  0x7f   : > { %s1914_s13 = scalar_lea.hbm %s2659_s4, 1024  ;;  %p2724_p7 = scmp.ne.s32.totalorder %s2711_s14, 0 }
  0x80   : > { %p1915_p4 = scmp.ne.s32.totalorder %s2659_s4, %s1914_s13  ;;  %p1921_p10 = scmp.lt.u32.totalorder %s1914_s13, %s2659_s4 }
  0x82   : > { %p1917_p9 = pnand %p1915_p4, %p2724_p7 }
  0x84   : > { %p1918_p3 = pneg %p1917_p9 }
  0x86   : > { %p1923_p0 = pnand %p1921_p10, %p1918_p3 }
  0x88   : > { %1926 = shalt.err (!%p1923_p0)
}
  0x89   : > { %s1927_s8 = scalar_lea.vmem %s336_s16, 1024  ;;  %p1935_p13 = scmp.lt.s32.totalorder %s336_s16, %s336_s16 }
  0x8a   : > { %p1928_p1 = scmp.ne.s32.totalorder %s336_s16, %s1927_s8  ;;  %p1936_p6 = scmp.lt.s32.totalorder %s1927_s8, %s1927_s8 }
  0x8c   : > { %p1930_p5 = pnand %p1928_p1, %p2724_p7  ;;  %p1937_p8 = por %p1936_p6, %p1935_p13 }
  0x8e   : > { %p1931_p11 = pneg %p1930_p5 }
  0x90   : > { %p1938_p2 = pnand %p1937_p8, %p1931_p11 }
  0x92   : > { %1941 = shalt.err (!%p1938_p2)
}
  0x93   : > { %p2725_p4 = scmp.ne.s32.totalorder %s2709_s27, 0  ;;  %s2726_s5 = smov 4  }
  0x94   : > { %s2727_s28 = smov 64   ;;  %s2150_s21 = smov [#allocation13]  }
  0x95   : > { %1677 = dma.hbm_to_vmem [thread:$0]  (!%p2725_p4), %s2659_s4, 1024, %s336_s16, [#allocation9], %s2727_s28, %s2727_s28, %s2726_s5  }
  0x96   : > { %s364_s29 = sshll.u32 %s2150_s21, 4  ;;  %s2151_s13 = smov [#allocation14]   ;;  %s365_s29 = int_to_ptr.vmem [resolvable:$true] %s364_s29 }
  0x97   : > { %s380_s3 = sshll.u32 %s2151_s13, 4  ;;  %s1942_s20 = scalar_lea.hbm %s2662_s7, 1024  ;;  %s381_s3 = int_to_ptr.vmem [resolvable:$true] %s380_s3 }
  0x98   : > { %p1943_p2 = scmp.ne.s32.totalorder %s2662_s7, %s1942_s20  ;;  %p1949_p10 = scmp.lt.u32.totalorder %s1942_s20, %s2662_s7 }
  0x9a   : > { %p1945_p9 = pnand %p1943_p2, %p2724_p7 }
  0x9c   : > { %p1946_p3 = pneg %p1945_p9 }
  0x9e   : > { %p1951_p0 = pnand %p1949_p10, %p1946_p3 }
  0xa0   : > { %1954 = shalt.err (!%p1951_p0)
}
  0xa1   : > { %s1955_s16 = scalar_lea.vmem %s365_s29, 1024  ;;  %p1963_p13 = scmp.lt.s32.totalorder %s365_s29, %s365_s29 }
  0xa2   : > { %p1956_p1 = scmp.ne.s32.totalorder %s365_s29, %s1955_s16  ;;  %p1964_p6 = scmp.lt.s32.totalorder %s1955_s16, %s1955_s16 }
  0xa4   : > { %p1958_p5 = pnand %p1956_p1, %p2724_p7  ;;  %p1965_p8 = por %p1964_p6, %p1963_p13 }
  0xa6   : > { %p1959_p11 = pneg %p1958_p5 }
  0xa8   : > { %p1966_p12 = pnand %p1965_p8, %p1959_p11 }
  0xaa   : > { %1969 = shalt.err (!%p1966_p12)
}
  0xab   : > { %1683 = dma.hbm_to_vmem [thread:$0]  (!%p2725_p4), %s2662_s7, 1024, %s365_s29, [#allocation12], %s2727_s28, %s2727_s28, %s2726_s5  }
  0xac   : > { %s1970_s15 = scalar_lea.hbm %s2664_s9, 1024 }
  0xad   : > { %p1971_p2 = scmp.ne.s32.totalorder %s2664_s9, %s1970_s15  ;;  %p1977_p3 = scmp.lt.u32.totalorder %s1970_s15, %s2664_s9 }
  0xaf   : > { %p1973_p12 = pnand %p1971_p2, %p2724_p7 }
  0xb1   : > { %p1974_p9 = pneg %p1973_p12 }
  0xb3   : > { %p1979_p10 = pnand %p1977_p3, %p1974_p9 }
  0xb5   : > { %1982 = shalt.err (!%p1979_p10)
}
  0xb6   : > { %s1983_s1 = scalar_lea.vmem %s381_s3, 1024  ;;  %p1991_p11 = scmp.lt.s32.totalorder %s381_s3, %s381_s3 }
  0xb7   : > { %p1984_p0 = scmp.ne.s32.totalorder %s381_s3, %s1983_s1  ;;  %p1992_p13 = scmp.lt.s32.totalorder %s1983_s1, %s1983_s1 }
  0xb9   : > { %p1986_p1 = pnand %p1984_p0, %p2724_p7  ;;  %p1993_p6 = por %p1992_p13, %p1991_p11 }
  0xbb   : > { %p1987_p5 = pneg %p1986_p1 }
  0xbd   : > { %p1994_p8 = pnand %p1993_p6, %p1987_p5 }
  0xbf   : > { %1997 = shalt.err (!%p1994_p8)
}
  0xc0   : > { %1686 = dma.hbm_to_vmem [thread:$0]  (!%p2725_p4), %s2664_s9, 1024, %s381_s3, [#allocation15], %s2727_s28, %s2727_s28, %s2726_s5  }
  0xc1   : > { %s2476_s23 = scalar_lea.hbm %s2655_s0, %s2349_s22  ;;  %s401_s27 = scalar_lea.vmem [#allocation2], %s2357_s11 }
  0xc2   : > { %s408_s20 = sshll.u32 %s401_s27, 4  ;;  %s2485_s21 = scalar_lea.hbm %s2657_s2, %s2349_s22  ;;  %s2479_s20 = int_to_ptr.vmem [resolvable:$true] %s408_s20 }
  0xc3   : > { %s2728_s13 = sand.u32 1, %s2136_s19   ;;  %s1998_s28 = scalar_lea.hbm %s2476_s23, 512 }
  0xc4   : > { %s2489_s5 = scalar_lea.sflag [#allocation3], %s2728_s13  ;;  %p1999_p7 = scmp.ne.s32.totalorder %s2476_s23, %s1998_s28 }
  0xc5   : > { %p2729_p4 = scmp.ne.s32.totalorder %s2723_s25, 0  ;;  %s2003_s8 = scalar_lea.hbm %s2655_s0, 1024 }
  0xc6   : > { %p2004_p9 = scmp.lt.u32.totalorder %s2476_s23, %s2655_s0  ;;  %p2005_p3 = scmp.lt.u32.totalorder %s2003_s8, %s1998_s28 }
  0xc7   : > { %p2001_p2 = pnand %p1999_p7, %p2729_p4  ;;  %p2007_p0 = scmp.lt.u32.totalorder %s1998_s28, %s2476_s23 }
  0xc8   : > { %p2006_p10 = por %p2005_p3, %p2004_p9 }
  0xc9   : > { %p2002_p12 = pneg %p2001_p2 }
  0xca   : > { %p2008_p1 = por %p2007_p0, %p2006_p10 }
  0xcc   : > { %p2009_p5 = pnand %p2008_p1, %p2002_p12 }
  0xce   : > { %2012 = shalt.err (!%p2009_p5)
}
  0xcf   : > { %s2013_s22 = scalar_lea.vmem %s2479_s20, 512  ;;  %s2152_s16 = smov [#allocation2]  }
  0xd0   : > { %p2014_p11 = scmp.ne.s32.totalorder %s2479_s20, %s2013_s22  ;;  %s2018_s14 = sshll.u32 %s2152_s16, 4  ;;  %s2019_s14 = int_to_ptr.vmem [resolvable:$false] %s2018_s14 }
  0xd1   : > { %s2020_s6 = scalar_lea.vmem %s2019_s14, 1024  ;;  %p2021_p8 = scmp.lt.s32.totalorder %s2479_s20, %s2019_s14 }
  0xd2   : > { %p2016_p13 = pnand %p2014_p11, %p2729_p4  ;;  %p2022_p7 = scmp.lt.s32.totalorder %s2020_s6, %s2013_s22 }
  0xd4   : > { %p2017_p6 = pneg %p2016_p13  ;;  %p2023_p2 = por %p2022_p7, %p2021_p8 }
  0xd6   : > { %p2024_p9 = pnand %p2023_p2, %p2017_p6 }
  0xd8   : > { %2027 = shalt.err (!%p2024_p9)
}
  0xd9   : > { %p2730_p12 = scmp.ne.s32.totalorder %s2721_s12, 0  ;;  %s2731_s27 = smov 8  }
  0xda   : > { %s2732_s10 = smov 128   ;;  %s443_s15 = scalar_lea.vmem [#allocation7], %s2357_s11 }
  0xdb   : > { %1690 = dma.hbm_to_vmem [thread:$0]  (!%p2730_p12), %s2476_s23, 512, %s2479_s20, %s2489_s5, %s2732_s10, %s2732_s10, %s2731_s27  }
  0xdc   : > { %s450_s13 = sshll.u32 %s443_s15, 4  ;;  %s2028_s28 = scalar_lea.hbm %s2485_s21, 512  ;;  %s2517_s13 = int_to_ptr.vmem [resolvable:$true] %s450_s13 }
  0xdd   : > { %p2029_p3 = scmp.ne.s32.totalorder %s2485_s21, %s2028_s28  ;;  %s2033_s8 = scalar_lea.hbm %s2657_s2, 1024 }
  0xde   : > { %p2034_p1 = scmp.lt.u32.totalorder %s2485_s21, %s2657_s2  ;;  %p2035_p5 = scmp.lt.u32.totalorder %s2033_s8, %s2028_s28 }
  0xdf   : > { %p2031_p10 = pnand %p2029_p3, %p2729_p4  ;;  %p2037_p13 = scmp.lt.u32.totalorder %s2028_s28, %s2485_s21 }
  0xe0   : > { %p2036_p11 = por %p2035_p5, %p2034_p1 }
  0xe1   : > { %p2032_p0 = pneg %p2031_p10 }
  0xe2   : > { %p2038_p6 = por %p2037_p13, %p2036_p11 }
  0xe4   : > { %p2039_p8 = pnand %p2038_p6, %p2032_p0 }
  0xe6   : > { %2042 = shalt.err (!%p2039_p8)
}
  0xe7   : > { %s2043_s11 = scalar_lea.vmem %s2517_s13, 512  ;;  %s2153_s23 = smov [#allocation7]  }
  0xe8   : > { %p2044_p7 = scmp.ne.s32.totalorder %s2517_s13, %s2043_s11  ;;  %s2048_s20 = sshll.u32 %s2153_s23, 4  ;;  %s2049_s20 = int_to_ptr.vmem [resolvable:$false] %s2048_s20 }
  0xe9   : > { %s2050_s5 = scalar_lea.vmem %s2049_s20, 1024  ;;  %p2051_p3 = scmp.lt.s32.totalorder %s2517_s13, %s2049_s20 }
  0xea   : > { %p2046_p2 = pnand %p2044_p7, %p2729_p4  ;;  %p2052_p10 = scmp.lt.s32.totalorder %s2050_s5, %s2043_s11 }
  0xec   : > { %p2047_p9 = pneg %p2046_p2  ;;  %p2053_p1 = por %p2052_p10, %p2051_p3 }
  0xee   : > { %p2054_p5 = pnand %p2053_p1, %p2047_p9 }
  0xf0   : > { %2057 = shalt.err (!%p2054_p5)
}
  0xf1   : > { %1696 = dma.hbm_to_vmem [thread:$0]  (!%p2730_p12), %s2485_s21, 512, %s2517_s13, %s2375_s30, %s2732_s10, %s2732_s10, %s2731_s27  }
  0xf2   : > { %p2733_p4 = scmp.ne.s32.totalorder %s2708_s24, 0 }
  0xf3   : > { %s2547_s25 = sand.u32 (!%p2733_p4), 1, %s2132_s18   ;;  %p2734_p0 = scmp.ne.s32.totalorder (!%p2733_p4), %s2718_s26, 0 }
  0xf4   : > { %462 = sbr.rel (%p2733_p4) target bundleno = 1100 (0x44c), region = 64  ;;  %s2550_s22 = sshll.u32 (!%p2733_p4), %s2547_s25, 5 }
  0xf5   : > { %s465_s12 = scalar_lea.sflag (!%p2733_p4), [#allocation3], %s2547_s25  ;;  %s2554_s16 = scalar_lea.vmem (!%p2733_p4), [#allocation2], %s2550_s22 }
  0xfb   : > { %2103 = dma.done.wait (%p2734_p0), %s465_s12, 512  }
  0xfc   : > { %2105 = vsyncadd (%p2734_p0), %s465_s12, 4294966784  ;;  %s2735_s30 = sld [smem:[#allocation25_spill]]  ;;  %s2562_s14 = scalar_lea.vmem [#allocation5], %s2550_s22 }
 0x102   : > { %s473_s24 = sand.u32 1, %s2735_s30  }
 0x103   : > { %s474_s21 = scalar_lea.sflag [#allocation6], %s473_s24 }
 0x104   : > { %2107 = dma.done.wait (%p2734_p0), %s474_s21, 1024  }
 0x105   : > { %2109 = vsyncadd (%p2734_p0), %s474_s21, 4294966272  ;;  %s2569_s6 = scalar_lea.vmem [#allocation7], %s2550_s22  ;;  %p2736_p12 = scmp.eq.s32.totalorder %s2735_s30, 0 }
 0x107   : > { %2111 = dma.done.wait (%p2736_p12), [#allocation9], 2048   ;;  %p2737_p11 = pmov %p2736_p12 }
 0x109   : > { %2113 = vsyncadd (%p2737_p11), [#allocation9], 4294965248  ;;  %p2738_p13 = pmov %p2737_p11 }
 0x10a   : > { %p2739_p6 = pmov %p2737_p11 }
 0x10b   : > { %2115 = dma.done.wait (%p2738_p13), [#allocation12], 2048  }
 0x10c   : > { %2117 = vsyncadd (%p2739_p6), [#allocation12], 4294965248  ;;  %p2740_p8 = pmov %p2739_p6 }
 0x10d   : > { %p2741_p7 = pmov %p2739_p6 }
 0x10e   : > { %2119 = dma.done.wait (%p2740_p8), [#allocation15], 1024  }
 0x10f   : > { %2121 = vsyncadd (%p2741_p7), [#allocation15], 4294966272  ;;  %v1756_v0 = vld [vmem:[#allocation10] sm:$0xff]   ;;  %v1757_v1 = vld [vmem:[#allocation10 + $0x8] sm:$0xff]   ;;  %s2742_s10 = sld [smem:[#allocation33_spill]]  ;;  %s2743_s28 = sld [smem:[#allocation34_spill]] }
 0x110   : > { %1535 = vmatprep.subr.bf16.mxu0 %v1756_v0  ;;  %v1758_v2 = vld [vmem:[#allocation10 + $0x10] sm:$0xff]   ;;  %v1759_v3 = vld [vmem:[#allocation10 + $0x18] sm:$0xff]   ;;  %v582_v4 = vld [vmem:[%s2562_s14] sm:$0xff]  ;;  %s2744_s8 = sld [smem:[#allocation35_spill]]  ;;  %s554_s1 = scalar_lea.vmem [#allocation16], %s2550_s22 }
 0x111   : > { %1536 = vmatpush3.bf16.msra.mxu0 %v1756_v0  ;;  %v583_v5 = vld [vmem:[%s2562_s14 + $0x8] sm:$0xff]  ;;  %v1760_v7 = vld [vmem:[#allocation10 + $0x20] sm:$0xff]   ;;  %v1762_v9 = vld [vmem:[#allocation10 + $0x30] sm:$0xff]   ;;  %s1242_s29 = sshll.u32 %s554_s1, 4  ;;  %s1484_s11 = sshll.u32 %s2735_s30, 9  ;;  %s2606_s29 = int_to_ptr.vmem [resolvable:$true] %s1242_s29 }
 0x112   : > { %1537 = vmatprep.subr.bf16.mxu0 %v1757_v1  ;;  %v586_v6 = vpack.c.bf16 %v583_v5, %v582_v4  ;;  %v1761_v8 = vld [vmem:[#allocation10 + $0x28] sm:$0xff]   ;;  %v1763_v10 = vld [vmem:[#allocation10 + $0x38] sm:$0xff]   ;;  %v1764_v11 = vld [vmem:[#allocation8] sm:$0xff]   ;;  %s2745_s23 = sld [smem:[#allocation27_spill]]  ;;  %s2746_s22 = sld [smem:[#allocation36_spill]] }
 0x113   : > { %v584_v12 = vld [vmem:[%s2562_s14 + $0x10] sm:$0xff]  ;;  %v585_v13 = vld [vmem:[%s2562_s14 + $0x18] sm:$0xff]  ;;  %v560_v14 = vld [vmem:[%s2554_s16] sm:$0xff]  ;;  %s2058_s30 = scalar_lea.vmem %s2606_s29, 512  ;;  %s2154_s24 = smov [#allocation16]  }
 0x114   : > { %1551 = vmatprep.mubr.bf16.mxu0 %v586_v6  ;;  %v561_v15 = vld [vmem:[%s2554_s16 + $0x8] sm:$0xff]  ;;  %v587_v16 = vpack.c.bf16 %v585_v13, %v584_v12  ;;  %v1766_v19 = vld [vmem:[#allocation8 + $0x10] sm:$0xff]   ;;  %v1767_v20 = vld [vmem:[#allocation8 + $0x18] sm:$0xff]   ;;  %p2059_p2 = scmp.ne.s32.totalorder %s2606_s29, %s2058_s30  ;;  %s2062_s21 = sshll.u32 %s2154_s24, 4  ;;  %s2063_s21 = int_to_ptr.vmem [resolvable:$false] %s2062_s21 }
 0x115   : > { %1538 = vmatpush3.bf16.msra.mxu0 %v1757_v1  ;;  %v1765_v17 = vld [vmem:[#allocation8 + $0x8] sm:$0xff]   ;;  %v564_v18 = vpack.c.bf16 %v561_v15, %v560_v14  ;;  %v1768_v21 = vld [vmem:[#allocation8 + $0x20] sm:$0xff]   ;;  %v1770_v23 = vld [vmem:[#allocation8 + $0x30] sm:$0xff]   ;;  %s2064_s14 = scalar_lea.vmem %s2063_s21, 1024  ;;  %p2065_p1 = scmp.lt.s32.totalorder %s2606_s29, %s2063_s21 }
 0x116   : > { %1539 = vmatprep.subr.bf16.mxu0 %v1758_v2  ;;  %v1769_v22 = vld [vmem:[#allocation8 + $0x28] sm:$0xff]   ;;  %v1771_v24 = vld [vmem:[#allocation8 + $0x38] sm:$0xff]   ;;  %v562_v25 = vld [vmem:[%s2554_s16 + $0x10] sm:$0xff]  ;;  %p2066_p5 = scmp.lt.s32.totalorder %s2064_s14, %s2058_s30 }
 0x117   : > { %v563_v26 = vld [vmem:[%s2554_s16 + $0x18] sm:$0xff]  ;;  %v1772_v27 = vld [vmem:[#allocation11] sm:$0xff]   ;;  %v799_v29 = vld [vmem:[%s2569_s6 + $0x8] sm:$0xff]  ;;  %s1229_s16 = scalar_lea.sflag [#allocation4], %s2547_s25 }
 0x118   : > { %v798_v28 = vld [vmem:[%s2569_s6] sm:$0xff]  ;;  %v565_v30 = vpack.c.bf16 %v563_v26, %v562_v25  ;;  %v1773_v32 = vld [vmem:[#allocation11 + $0x8] sm:$0xff]   ;;  %v1774_v33 = vld [vmem:[#allocation11 + $0x10] sm:$0xff]   ;;  %s2611_s12 = scalar_lea.hbm %s2746_s22, %s1484_s11  ;;  %p2747_p9 = scmp.ne.s32.totalorder %s2745_s23, 0 }
 0x119   : > { %1540 = vmatpush3.bf16.msra.mxu0 %v1758_v2  ;;  %v802_v31 = vpack.c.bf16 %v799_v29, %v798_v28  ;;  %v1775_v34 = vld [vmem:[#allocation11 + $0x18] sm:$0xff]   ;;  %v1776_v35 = vld [vmem:[#allocation11 + $0x20] sm:$0xff]   ;;  %v1777_v36 = vld [vmem:[#allocation11 + $0x28] sm:$0xff]   ;;  %p2067_p4 = por %p2066_p5, %p2065_p1 }
 0x11a   : > { %1541 = vmatprep.subr.bf16.mxu0 %v1759_v3  ;;  %v1778_v37 = vld [vmem:[#allocation11 + $0x30] sm:$0xff]   ;;  %v1779_v38 = vld [vmem:[#allocation11 + $0x38] sm:$0xff]   ;;  %v1780_v42 = vld [vmem:[#allocation13] sm:$0xff]   ;;  %p2060_p3 = pnand %p2059_p2, %p2747_p9 }
 0x11b   : > { %v800_v39 = vld [vmem:[%s2569_s6 + $0x10] sm:$0xff]  ;;  %v801_v40 = vld [vmem:[%s2569_s6 + $0x18] sm:$0xff]  ;;  %1595 = vmatprep.subr.bf16.mxu1 %v1780_v42  ;;  %v1781_v43 = vld [vmem:[#allocation13 + $0x8] sm:$0xff]  }
 0x11c   : > { %v803_v41 = vpack.c.bf16 %v801_v40, %v800_v39  ;;  %1596 = vmatpush3.bf16.msra.mxu1 %v1780_v42  ;;  %v1782_v44 = vld [vmem:[#allocation13 + $0x10] sm:$0xff]   ;;  %v1783_v45 = vld [vmem:[#allocation13 + $0x18] sm:$0xff]   ;;  %v1784_v46 = vld [vmem:[#allocation13 + $0x20] sm:$0xff]   ;;  %p2061_p10 = pneg %p2060_p3 }
 0x11d   : > { %1542 = vmatpush3.bf16.msra.mxu0 %v1759_v3  ;;  %1597 = vmatprep.subr.bf16.mxu1 %v1781_v43  ;;  %v1785_v47 = vld [vmem:[#allocation13 + $0x28] sm:$0xff]   ;;  %v1786_v48 = vld [vmem:[#allocation13 + $0x30] sm:$0xff]   ;;  %v1787_v49 = vld [vmem:[#allocation13 + $0x38] sm:$0xff]  }
 0x11e   : > { %1543 = vmatprep.subr.bf16.mxu0 %v1760_v7  ;;  %v1457_v50 = vld [vmem:[%s2742_s10] ss:$0 sm:$0xff]  ;;  %v1793_v26 = vld [vmem:[#allocation14 + $0x28] sm:$0xff]   ;;  %v1795_v28 = vld [vmem:[#allocation14 + $0x38] sm:$0xff]   ;;  %p2068_p0 = pnand %p2067_p4, %p2061_p10 }
 0x11f   : > { %v1792_v25 = vld [vmem:[#allocation14 + $0x20] sm:$0xff]  }
 0x120   : > { %1598 = vmatpush3.bf16.msra.mxu1 %v1781_v43  ;;  %v1458_v29 = vld [vmem:[%s2743_s28] ss:$0 sm:$0xff] }
 0x121   : > { %1544 = vmatpush3.bf16.msra.mxu0 %v1760_v7  ;;  %1599 = vmatprep.subr.bf16.mxu1 %v1782_v44 }
 0x122   : > { %1545 = vmatprep.subr.bf16.mxu0 %v1761_v8 }
 0x124   : > { %1600 = vmatpush3.bf16.msra.mxu1 %v1782_v44 }
 0x125   : > { %1546 = vmatpush3.bf16.msra.mxu0 %v1761_v8  ;;  %1601 = vmatprep.subr.bf16.mxu1 %v1783_v45 }
 0x126   : > { %1547 = vmatprep.subr.bf16.mxu0 %v1762_v9 }
 0x128   : > { %1602 = vmatpush3.bf16.msra.mxu1 %v1783_v45 }
 0x129   : > { %1548 = vmatpush3.bf16.msra.mxu0 %v1762_v9  ;;  %1603 = vmatprep.subr.bf16.mxu1 %v1784_v46 }
 0x12a   : > { %1549 = vmatprep.subr.bf16.mxu0 %v1763_v10 }
 0x12c   : > { %1604 = vmatpush3.bf16.msra.mxu1 %v1784_v46 }
 0x12d   : > { %1550 = vmatpush3.bf16.msra.mxu0 %v1763_v10  ;;  %1605 = vmatprep.subr.bf16.mxu1 %v1785_v47 }
 0x12e   : > { %1555 = vmatprep.subr.bf16.mxu0 %v1764_v11 }
 0x130   : > { %1552 = vmatmul.mubr.bf16.vlgmr.msra.gmra.mrb[0].mxu0 %v587_v16  ;;  %1606 = vmatpush3.bf16.msra.mxu1 %v1785_v47 }
 0x131   : > { %1556 = vmatpush3.bf16.msra.mxu0 %v1764_v11  ;;  %1571 = vmatprep.mubr.bf16.mxu0 %v564_v18 }
 0x132   : > { %1557 = vmatprep.subr.bf16.mxu0 %v1765_v17  ;;  %1607 = vmatprep.subr.bf16.mxu1 %v1786_v48 }
 0x134   : > { %1608 = vmatpush3.bf16.msra.mxu1 %v1786_v48 }
 0x135   : > { %1558 = vmatpush3.bf16.msra.mxu0 %v1765_v17  ;;  %1609 = vmatprep.subr.bf16.mxu1 %v1787_v49 }
 0x136   : > { %1559 = vmatprep.subr.bf16.mxu0 %v1766_v19 }
 0x138   : > { %1610 = vmatpush3.bf16.msra.mxu1 %v1787_v49 }
 0x139   : > { %1560 = vmatpush3.bf16.msra.mxu0 %v1766_v19 }
 0x13a   : > { %1561 = vmatprep.subr.bf16.mxu0 %v1767_v20 }
 0x13d   : > { %1562 = vmatpush3.bf16.msra.mxu0 %v1767_v20 }
 0x13e   : > { %1563 = vmatprep.subr.bf16.mxu0 %v1768_v21 }
 0x141   : > { %1564 = vmatpush3.bf16.msra.mxu0 %v1768_v21  ;;  %v1788_v21 = vld [vmem:[#allocation14] sm:$0xff]  }
 0x142   : > { %1565 = vmatprep.subr.bf16.mxu0 %v1769_v22  ;;  %1615 = vmatprep.subr.bf16.mxu1 %v1788_v21 }
 0x145   : > { %1566 = vmatpush3.bf16.msra.mxu0 %v1769_v22  ;;  %v1789_v22 = vld [vmem:[#allocation14 + $0x8] sm:$0xff]  }
 0x146   : > { %1567 = vmatprep.subr.bf16.mxu0 %v1770_v23 }
 0x149   : > { %1568 = vmatpush3.bf16.msra.mxu0 %v1770_v23  ;;  %v1790_v23 = vld [vmem:[#allocation14 + $0x10] sm:$0xff]  }
 0x14a   : > { %1569 = vmatprep.subr.bf16.mxu0 %v1771_v24 }
 0x14d   : > { %1570 = vmatpush3.bf16.msra.mxu0 %v1771_v24  ;;  %v1791_v24 = vld [vmem:[#allocation14 + $0x18] sm:$0xff]  }
 0x14e   : > { %1575 = vmatprep.subr.bf16.mxu0 %v1772_v27 }
 0x150   : > { %1572 = vmatmul.mubr.bf16.vlgmr.msra.gmra.mrb[0].mxu0 %v565_v30 }
 0x151   : > { %1576 = vmatpush3.bf16.msra.mxu0 %v1772_v27  ;;  %1591 = vmatprep.mubr.bf16.mxu0 %v802_v31  ;;  %v1794_v27 = vld [vmem:[#allocation14 + $0x30] sm:$0xff]  }
 0x152   : > { %1577 = vmatprep.subr.bf16.mxu0 %v1773_v32 }
 0x155   : > { %1578 = vmatpush3.bf16.msra.mxu0 %v1773_v32 }
 0x156   : > { %1579 = vmatprep.subr.bf16.mxu0 %v1774_v33 }
 0x159   : > { %1580 = vmatpush3.bf16.msra.mxu0 %v1774_v33 }
 0x15a   : > { %1581 = vmatprep.subr.bf16.mxu0 %v1775_v34 }
 0x15d   : > { %1582 = vmatpush3.bf16.msra.mxu0 %v1775_v34 }
 0x15e   : > { %1583 = vmatprep.subr.bf16.mxu0 %v1776_v35 }
 0x161   : > { %1584 = vmatpush3.bf16.msra.mxu0 %v1776_v35 }
 0x162   : > { %1585 = vmatprep.subr.bf16.mxu0 %v1777_v36 }
 0x165   : > { %1586 = vmatpush3.bf16.msra.mxu0 %v1777_v36 }
 0x166   : > { %1587 = vmatprep.subr.bf16.mxu0 %v1778_v37 }
 0x169   : > { %1588 = vmatpush3.bf16.msra.mxu0 %v1778_v37 }
 0x16a   : > { %1589 = vmatprep.subr.bf16.mxu0 %v1779_v38 }
 0x16d   : > { %1590 = vmatpush3.bf16.msra.mxu0 %v1779_v38 }
 0x170   : > { %1592 = vmatmul.mubr.bf16.vlgmr.msra.gmra.mrb[0].mxu0 %v803_v41 }
 0x243   : > { %v1593_v51 = vpop.f32.mrb[0].mxu0 }
 0x244   : > { %v930_v52 = vadd.f32 %v1593_v51, %v1457_v50  ;;  %v902_v53 = vpop.f32.mrb[1].mxu0 }
 0x245   : > { %v928_v54 = vadd.f32 %v1457_v50, %v902_v53  ;;  %v1594_v55 = vpop.f32.mrb[2].mxu0 }
 0x246   : > { %v934_v56 = vsub.f32 0.0, %v930_v52  ;;  %v931_v57 = vadd.f32 %v1594_v55, %v1457_v50  ;;  %v905_v58 = vpop.f32.mrb[3].mxu0 }
 0x247   : > { %v932_v59 = vsub.f32 0.0, %v928_v54  ;;  %v929_v60 = vadd.f32 %v1457_v50, %v905_v58 }
 0x248   : > { %v940_v61 = vmul.f32 1.442695, %v934_v56  ;;  %v935_v62 = vsub.f32 0.0, %v931_v57 }
 0x249   : > { %v936_v63 = vmul.f32 1.442695, %v932_v59  ;;  %v933_v0 = vsub.f32 0.0, %v929_v60 }
 0x24a   : > { %1796 = vpow2.f32 %v940_v61  ;;  %v942_v1 = vmul.f32 1.442695, %v935_v62 }
 0x24b   : > { %1798 = vpow2.f32 %v936_v63  ;;  %v938_v2 = vmul.f32 1.442695, %v933_v0  ;;  %v1467_v0 = vld [vmem:[%s2744_s8] ss:$0 sm:$0xff] }
 0x24c   : > { %1800 = vpow2.f32 %v942_v1 }
 0x24d   : > { %1802 = vpow2.f32 %v938_v2 }
 0x254   : > { %v1797_v3 = vpop.eup %1796 }
 0x255   : > { %v1799_v4 = vpop.eup %1798  ;;  %v946_v5 = vadd.f32 1.0, %v1797_v3 }
 0x256   : > { %v1801_v6 = vpop.eup %1800  ;;  %v944_v7 = vadd.f32 1.0, %v1799_v4 }
 0x257   : > { %v1803_v8 = vpop.eup %1802  ;;  %1804 = vrcp.f32 %v946_v5  ;;  %v947_v9 = vadd.f32 1.0, %v1801_v6 }
 0x258   : > { %1806 = vrcp.f32 %v944_v7  ;;  %v945_v10 = vadd.f32 1.0, %v1803_v8 }
 0x259   : > { %1808 = vrcp.f32 %v947_v9 }
 0x25a   : > { %1810 = vrcp.f32 %v945_v10 }
 0x261   : > { %v1805_v11 = vpop.eup %1804 }
 0x262   : > { %v1807_v12 = vpop.eup %1806  ;;  %v954_v15 = vmul.f32 %v1805_v11, %v930_v52 }
 0x263   : > { %v1809_v13 = vpop.eup %1808  ;;  %v952_v17 = vmul.f32 %v1807_v12, %v928_v54 }
 0x264   : > { %v1811_v14 = vpop.eup %1810  ;;  %v955_v16 = vmul.f32 %v1809_v13, %v931_v57 }
 0x265   : > { %v953_v18 = vmul.f32 %v1811_v14, %v929_v60 }
 0x266   : > { %v957_v19 = vpack.c.bf16 %v955_v16, %v954_v15 }
 0x267   : > { %v956_v20 = vpack.c.bf16 %v953_v18, %v952_v17 }
 0x269   : > { %1611 = vmatprep.mubr.bf16.mxu1 %v956_v20 }
 0x26a   : > { %1612 = vmatmul.mubr.bf16.vlgmr.msra.gmra.mrb[0].mxu1 %v957_v19 }
 0x26b   : > { %1616 = vmatpush3.bf16.msra.mxu1 %v1788_v21 }
 0x26c   : > { %1617 = vmatprep.subr.bf16.mxu1 %v1789_v22 }
 0x26f   : > { %1618 = vmatpush3.bf16.msra.mxu1 %v1789_v22 }
 0x270   : > { %1619 = vmatprep.subr.bf16.mxu1 %v1790_v23 }
 0x273   : > { %1620 = vmatpush3.bf16.msra.mxu1 %v1790_v23 }
 0x274   : > { %1621 = vmatprep.subr.bf16.mxu1 %v1791_v24 }
 0x277   : > { %1622 = vmatpush3.bf16.msra.mxu1 %v1791_v24 }
 0x278   : > { %1623 = vmatprep.subr.bf16.mxu1 %v1792_v25 }
 0x27b   : > { %1624 = vmatpush3.bf16.msra.mxu1 %v1792_v25 }
 0x27c   : > { %1625 = vmatprep.subr.bf16.mxu1 %v1793_v26 }
 0x27f   : > { %1626 = vmatpush3.bf16.msra.mxu1 %v1793_v26 }
 0x280   : > { %1627 = vmatprep.subr.bf16.mxu1 %v1794_v27 }
 0x283   : > { %1628 = vmatpush3.bf16.msra.mxu1 %v1794_v27 }
 0x284   : > { %1629 = vmatprep.subr.bf16.mxu1 %v1795_v28 }
 0x287   : > { %1630 = vmatpush3.bf16.msra.mxu1 %v1795_v28 }
 0x33d   : > { %v1613_v30 = vpop.f32.mrb[0].mxu1 }
 0x33e   : > { %v1072_v31 = vadd.f32 %v1613_v30, %v1458_v29  ;;  %v1063_v32 = vpop.f32.mrb[1].mxu1 }
 0x33f   : > { %v1064_v33 = vadd.f32 %v1458_v29, %v1063_v32  ;;  %v1614_v34 = vpop.f32.mrb[2].mxu1 }
 0x340   : > { %v1080_v35 = vsub.f32 0.0, %v1072_v31  ;;  %v1075_v36 = vadd.f32 %v1614_v34, %v1458_v29  ;;  %v1066_v37 = vpop.f32.mrb[3].mxu1 }
 0x341   : > { %v1078_v38 = vsub.f32 0.0, %v1064_v33  ;;  %v1067_v39 = vadd.f32 %v1458_v29, %v1066_v37 }
 0x342   : > { %v1086_v40 = vmul.f32 1.442695, %v1080_v35  ;;  %v1081_v41 = vsub.f32 0.0, %v1075_v36 }
 0x343   : > { %v1082_v42 = vmul.f32 1.442695, %v1078_v38  ;;  %v1079_v43 = vsub.f32 0.0, %v1067_v39 }
 0x344   : > { %1812 = vpow2.f32 %v1086_v40  ;;  %v1088_v44 = vmul.f32 1.442695, %v1081_v41 }
 0x345   : > { %1814 = vpow2.f32 %v1082_v42  ;;  %v1084_v45 = vmul.f32 1.442695, %v1079_v43 }
 0x346   : > { %1816 = vpow2.f32 %v1088_v44 }
 0x347   : > { %1818 = vpow2.f32 %v1084_v45 }
 0x34e   : > { %v1813_v46 = vpop.eup %1812 }
 0x34f   : > { %v1815_v47 = vpop.eup %1814  ;;  %v1092_v48 = vadd.f32 1.0, %v1813_v46 }
 0x350   : > { %v1817_v49 = vpop.eup %1816  ;;  %v1090_v50 = vadd.f32 1.0, %v1815_v47 }
 0x351   : > { %v1819_v51 = vpop.eup %1818  ;;  %1820 = vrcp.f32 %v1092_v48  ;;  %v1093_v52 = vadd.f32 1.0, %v1817_v49 }
 0x352   : > { %1822 = vrcp.f32 %v1090_v50  ;;  %v1091_v53 = vadd.f32 1.0, %v1819_v51 }
 0x353   : > { %1824 = vrcp.f32 %v1093_v52 }
 0x354   : > { %1826 = vrcp.f32 %v1091_v53 }
 0x35b   : > { %v1821_v54 = vpop.eup %1820 }
 0x35c   : > { %v1823_v55 = vpop.eup %1822  ;;  %v1100_v58 = vmul.f32 %v1821_v54, %v1072_v31 }
 0x35d   : > { %v1825_v56 = vpop.eup %1824  ;;  %v1098_v60 = vmul.f32 %v1823_v55, %v1064_v33 }
 0x35e   : > { %v1827_v57 = vpop.eup %1826  ;;  %v1101_v59 = vmul.f32 %v1825_v56, %v1075_v36 }
 0x35f   : > { %v1099_v61 = vmul.f32 %v1827_v57, %v1067_v39 }
 0x360   : > { %v1103_v62 = vpack.c.bf16 %v1101_v59, %v1100_v58 }
 0x361   : > { %v1102_v63 = vpack.c.bf16 %v1099_v61, %v1098_v60 }
 0x363   : > { %1631 = vmatprep.mubr.bf16.mxu1 %v1102_v63 }
 0x364   : > { %1632 = vmatmul.mubr.bf16.vlgmr.msra.gmra.mrb[4].mxu1 %v1103_v62 }
 0x437   : > { %v1633_v1 = vpop.f32.mrb[4].mxu1 }
 0x438   : > { %v1218_v2 = vadd.f32 %v1633_v1, %v1467_v0  ;;  %v1209_v3 = vpop.f32.mrb[5].mxu1 }
 0x439   : > { %v1210_v4 = vadd.f32 %v1467_v0, %v1209_v3  ;;  %v1634_v5 = vpop.f32.mrb[6].mxu1 }
 0x43a   : > { %1226 = vst [vmem:[%s554_s1 + $0x10] sm:$0xff] %v1218_v2  ;;  %v1221_v6 = vadd.f32 %v1634_v5, %v1467_v0  ;;  %v1212_v7 = vpop.f32.mrb[7].mxu1 }
 0x43b   : > { %1224 = vst [vmem:[%s554_s1] sm:$0xff] %v1210_v4  ;;  %v1213_v8 = vadd.f32 %v1467_v0, %v1212_v7 }
 0x43c   : > { %1227 = vst [vmem:[%s554_s1 + $0x18] sm:$0xff] %v1221_v6 }
 0x43d   : > { %1225 = vst [vmem:[%s554_s1 + $0x8] sm:$0xff] %v1213_v8 }
 0x43e   : > { %2071 = shalt.err (!%p2068_p0)
}
 0x43f   : > { %s2072_s6 = scalar_lea.hbm %s2611_s12, 512  ;;  %s2076_s10 = scalar_lea.hbm %s2746_s22, 1024 }
 0x440   : > { %p2073_p12 = scmp.ne.s32.totalorder %s2611_s12, %s2072_s6  ;;  %p2077_p6 = scmp.lt.u32.totalorder %s2611_s12, %s2746_s22 }
 0x441   : > { %p2078_p8 = scmp.lt.u32.totalorder %s2076_s10, %s2072_s6  ;;  %p2080_p2 = scmp.lt.u32.totalorder %s2072_s6, %s2611_s12 }
 0x442   : > { %p2074_p11 = pnand %p2073_p12, %p2747_p9 }
 0x443   : > { %p2079_p7 = por %p2078_p8, %p2077_p6 }
 0x444   : > { %p2075_p13 = pneg %p2074_p11 }
 0x445   : > { %p2081_p3 = por %p2080_p2, %p2079_p7 }
 0x447   : > { %p2082_p10 = pnand %p2081_p3, %p2075_p13 }
 0x449   : > { %2085 = shalt.err (!%p2082_p10)
}
 0x44a   : > { %s2155_s28 = smov 128   ;;  %s2156_s3 = smov 8  }
 0x44b   : > { %1669 = dma.vmem_to_hbm [thread:$0]  (%p2747_p9), %s2606_s29, 512, %s2611_s12, %s1229_s16, %s2155_s28, %s2155_s28, %s2156_s3  }
 0x44c PF: > { %s2748_s17 = sld [smem:[#allocation23_spill]]  ;;  %s2749_s8 = sld [smem:[#allocation29_spill]] }
 0x44d   : > { %s2750_s1 = sld [smem:[#allocation24_spill]] }
 0x452   : > { %s1257_s11 = sand.u32 1, %s2748_s17   ;;  %p2751_p1 = scmp.ne.s32.totalorder %s2749_s8, 0 }
 0x453   : > { %p2752_p5 = scmp.ge.s32.totalorder %s2750_s1, 2  ;;  %s1258_s20 = scalar_lea.sflag [#allocation4], %s1257_s11 }
 0x455   : > { %p1698_p4 = pnand %p2752_p5, %p2751_p1 }
 0x457   : > { %2123 = dma.done.wait (!%p1698_p4), %s1258_s20, 512  }
 0x458   : > { %2125 = vsyncadd (!%p1698_p4), %s1258_s20, 4294966784  ;;  %s2753_s20 = sld [smem:[#allocation26_spill]]  ;;  %s2754_s5 = sld [smem:[#allocation28_spill]] }
 0x459   : > { %s2755_s17 = smov %s2132_s18  ;;  %s2756_s18 = smov %s2136_s19 }
 0x45e   : > { %p30_p0 = scmp.ge.s32.totalorder %s2753_s20, 4   ;;  %s2757_s19 = smov %s2754_s5 }
 0x460   :  { %32 = sbr.rel (!%p30_p0) target bundleno = 18 (0x12), region = 153 }
 0x467   :  { %1263 = vsyncpa [#allocation3], 1 }
 0x468   :  { %1265 = vsyncpa [#allocation3 + $0x1], 1 }
 0x469   :  { %1266 = vsyncpa [#allocation6], 1 }
 0x46a   :  { %1268 = vsyncpa [#allocation6 + $0x1], 1 }
 0x46b   :  { %1269 = vsyncpa [#allocation9], 1 }
 0x46c   :  { %1270 = vsyncpa [#allocation12], 1 }
 0x46d   :  { %1271 = vsyncpa [#allocation15], 1 }
 0x46e   :  { %1272 = vsyncpa [#allocation4], 1 }
 0x46f   :  { %1274 = vsyncpa [#allocation4 + $0x1], 1 }

</bundles_post_ra>
